<compile_context>
chip_gen: v7x
topology: tpu7x:2x2x1
jax: 0.10.0
libtpu: 0.0.40
codegen_flags: <defaults>
</compile_context>

<pallas_src>
import jax
import jax.numpy as jnp
from jax.experimental import pallas as pl
from jax.experimental.pallas import tpu as pltpu


_MAX_TILE_ROWS = 8192


# ---------------------------------------------------------------------------
# Small helpers
# ---------------------------------------------------------------------------
def _vmem_limit_bytes():
    """Per-generation scoped VMEM budget."""
    try:
        kind = jax.devices()[0].device_kind.lower()
    except Exception:
        kind = ""
    if "v6" in kind:
        return 64 * 1024 * 1024
    if "v7" in kind:
        return 48 * 1024 * 1024          # v7x has only 64 MiB physical per TC
    return 32 * 1024 * 1024              # v5e (default scoped limit is only 16 MiB)


def _choose_tile(n, e_dims, itemsize, g):
    """Largest row tile that keeps streamed inputs + f32 temporaries + the (G, tile)
    membership mask comfortably inside half the scoped-VMEM budget."""
    budget = _vmem_limit_bytes() // 2
    e_sum = sum(e_dims)
    lane_pad = lambda e: -(-e // 128) * 128        # minor dim pads to 128 lanes in vregs
    padded_sum = sum(lane_pad(e) for e in e_dims)
    bytes_per_row = 2 * e_sum * itemsize           # double-buffered streamed inputs
    bytes_per_row += 3 * padded_sum * 4            # in-kernel f32 temporaries (xs, h, ...)
    bytes_per_row += 8 * g                         # (G, tile) mask + int compares
    max_rows = budget // max(bytes_per_row, 1)
    tile = min(_MAX_TILE_ROWS, max_rows)
    tile = max((tile // 128) * 128, 128)           # multiple of 128 (lane-dense row out)
    if n <= tile:
        return max(n, 1)                           # single full-array block (8,128)-exempt
    return tile


def _resident_spec(shape):
    """Full-array block that stays VMEM-resident across the whole grid."""
    nd = len(shape)
    return pl.BlockSpec(shape, lambda i, _nd=nd: (0,) * _nd)


def _n_mlp_args(n_layers, num_x):
    # layer0: num_x weight pieces + bias, middle: (W, b) each, last: (W^T, b)
    return num_x + 2 * n_layers - 1


def _dot_abT(a, b):
    # a:[M,K] @ b:[N,K]^T -> [M,N]   (lane-dense result, no explicit transpose)
    return jax.lax.dot_general(a, b, (((1,), (1,)), ((), ())),
                               preferred_element_type=jnp.float32)


def _mlp_forward(p, pieces, n_layers, num_x):
    """MLP (Linear/ReLU/.../Linear) + sigmoid; returns a (1, rows) lane-dense slab.
    `p` is a flat tuple of refs as produced by _prep_mlp_params; the layer-0 weight is
    split across the `pieces` (fused feature-concat)."""
    if n_layers == 1:
        y = p[num_x][...].astype(jnp.float32)                      # (1, 1) bias
        for k in range(num_x):
            y = y + _dot_abT(p[k][...].astype(jnp.float32), pieces[k])
        return jax.nn.sigmoid(y)
    h = p[num_x][...].astype(jnp.float32)                          # (1, H) bias
    for k in range(num_x):
        h = h + jnp.dot(pieces[k], p[k][...].astype(jnp.float32),
                        preferred_element_type=jnp.float32)        # (rows, H)
    h = jnp.maximum(h, 0.0)
    o = num_x + 1
    for _ in range(1, n_layers - 1):
        h = jnp.dot(h, p[o][...].astype(jnp.float32),
                    preferred_element_type=jnp.float32) + p[o + 1][...].astype(jnp.float32)
        h = jnp.maximum(h, 0.0)
        o += 2
    # last layer (out_dim == 1): w^T @ h^T -> (1, rows) lane-dense
    y = _dot_abT(p[o][...].astype(jnp.float32), h) + p[o + 1][...].astype(jnp.float32)
    return jax.nn.sigmoid(y)


# ---------------------------------------------------------------------------
# Streaming kernel: per-row MLP head + per-tile partial segment sums
# ---------------------------------------------------------------------------
def _make_stream_kernel(num_x, n_row, have_pool, tile_n, n_rows_total):
    have_row = n_row > 0
    n_row_args = _n_mlp_args(n_row, num_x) if have_row else 0

    def kernel(*refs):
        idx = 0
        x_refs = refs[idx: idx + num_x]; idx += num_x
        if have_pool:
            starts_ref, ends_ref = refs[idx: idx + 2]; idx += 2
        if have_row:
            row_p = refs[idx: idx + n_row_args]; idx += n_row_args
        if have_row:
            row_out_ref = refs[idx]; idx += 1
        if have_pool:
            psum_ref = refs[idx]; idx += 1

        i = pl.program_id(0)
        xs = [r[...].astype(jnp.float32) for r in x_refs]          # (tile, E_k) f32

        if have_row:
            # lane-dense (1, tile) output; tail garbage rows are clipped on write-back
            row_out_ref[...] = _mlp_forward(row_p, xs, n_row, num_x)

        if have_pool:
            # on-chip segment-membership mask for this tile (no [G, N] HBM one-hot)
            rid = jax.lax.broadcasted_iota(jnp.int32, (1, tile_n), 1) + i * tile_n
            mask = ((rid >= starts_ref[...]) & (rid < ends_ref[...])).astype(jnp.float32)
            # zero out-of-bounds tail rows: 0 * stale-VMEM-garbage could be NaN otherwise
            valid = (jax.lax.broadcasted_iota(jnp.int32, (tile_n, 1), 0)
                     + i * tile_n) < n_rows_total
            parts = []
            for x in xs:
                xm = jnp.where(valid, x, 0.0)
                parts.append(jnp.dot(mask, xm, preferred_element_type=jnp.float32))
            psum_ref[...] = jnp.concatenate(parts, axis=-1)[None]  # (1, G, E_total)

    return kernel


# ---------------------------------------------------------------------------
# Tiny single-block kernel: pooled-embedding MLP head (satisfiability)
# ---------------------------------------------------------------------------
def _make_pool_kernel(n_layers):
    def kernel(*refs):
        x_ref = refs[0]
        p = refs[1:-1]
        out_ref = refs[-1]
        out_ref[...] = _mlp_forward(p, [x_ref[...].astype(jnp.float32)], n_layers, 1)
    return kernel


# ---------------------------------------------------------------------------
# Wrapper: one fused streaming pass per embedding stream (+ tiny pool kernel)
# ---------------------------------------------------------------------------
def _readout_call(x_pieces, row_args, n_row, pool_args, n_pool, seg_lengths):
    """x_pieces: list of [N, E_k] arrays (logically concatenated along features).
    Returns (row_out [N] or None, pool_out [G] or None)."""
    num_x = len(x_pieces)
    n = int(x_pieces[0].shape[0])
    e_dims = [int(x.shape[1]) for x in x_pieces]
    have_row = row_args is not None
    have_pool = pool_args is not None

    lengths = None
    g = 0
    if have_pool:
        lengths = jnp.asarray(seg_lengths).astype(jnp.int32)
        g = int(lengths.shape[0])

    itemsize = max(jnp.dtype(x.dtype).itemsize for x in x_pieces)
    tile = _choose_tile(n, e_dims, itemsize, g)
    grid_n = pl.cdiv(n, tile)

    # activations streamed in native dtype (cast to f32 inside the kernel only)
    flat_args = list(x_pieces)
    in_specs = [pl.BlockSpec((tile, e), lambda i: (i, 0)) for e in e_dims]

    if have_pool:
        offs = jnp.concatenate([jnp.zeros((1,), jnp.int32), jnp.cumsum(lengths)])
        starts = offs[:-1].reshape(g, 1)
        ends = offs[1:].reshape(g, 1)
        flat_args += [starts, ends]
        in_specs += [_resident_spec((g, 1)) for _ in range(2)]

    if have_row:
        flat_args += list(row_args)
        in_specs += [_resident_spec(tuple(a.shape)) for a in row_args]

    e_total = sum(e_dims)
    out_shapes, out_specs = [], []
    if have_row:
        out_shapes.append(jax.ShapeDtypeStruct((1, n), jnp.float32))
        out_specs.append(pl.BlockSpec((1, tile), lambda i: (0, i)))
    if have_pool:
        out_shapes.append(jax.ShapeDtypeStruct((grid_n, g, e_total), jnp.float32))
        out_specs.append(pl.BlockSpec((1, g, e_total), lambda i: (i, 0, 0)))

    kernel = _make_stream_kernel(num_x, n_row if have_row else 0, have_pool, tile, n)

    outs = pl.pallas_call(
        kernel,
        out_shape=tuple(out_shapes),
        grid=(grid_n,),
        in_specs=in_specs,
        out_specs=tuple(out_specs),
        compiler_params=pltpu.CompilerParams(
            # no cross-tile carried state -> row axis splits across v7x's two TCs
            dimension_semantics=("parallel",),
            vmem_limit_bytes=_vmem_limit_bytes()),
    )(*flat_args)

    row_out = pool_out = None
    o = 0
    if have_row:
        row_out = outs[o][0]; o += 1
    if have_pool:
        partials = outs[o]; o += 1
        # tiny (num_tiles, G, 2E) reduction + mean scaling: negligible vs the N-row stream
        inv = (1.0 / jnp.maximum(lengths, 1).astype(jnp.float32)).reshape(g, 1)
        pooled = partials.sum(axis=0) * inv                       # (G, E_total)
        pool_raw = pl.pallas_call(
            _make_pool_kernel(n_pool),
            out_shape=jax.ShapeDtypeStruct((1, g), jnp.float32),
        )(pooled, *pool_args)
        pool_out = pool_raw[0]
    return row_out, pool_out


# ---------------------------------------------------------------------------
# Parameter init / packing (mirrors MLP(in, emb, 1, num_layer=num_fc))
# ---------------------------------------------------------------------------
def init_mlp_params(key, in_size, hidden_size, out_size, num_layer):
    sizes = [in_size] + [hidden_size] * (num_layer - 1) + [out_size]
    params = []
    for i in range(num_layer):
        key, kw = jax.random.split(key)
        w = (jax.random.normal(kw, (sizes[i], sizes[i + 1]), jnp.float32)
             / jnp.sqrt(float(sizes[i])))
        b = jnp.zeros((1, sizes[i + 1]), jnp.float32)
        params.append((w, b))
    return params


def _prep_mlp_params(params, split_sizes):
    """[(W,b), ...] -> flat kernel args: layer-0 weight split across input pieces,
    last-layer weight stored transposed (1, H) for the lane-dense final reduction."""
    L = len(params)
    args = []
    if L == 1:
        w, b = params[0]
        off = 0
        for s in split_sizes:
            args.append(jnp.transpose(w[off:off + s, :]))      # (1, E_k)
            off += s
        args.append(b.reshape(1, 1))
        return args
    w0, b0 = params[0]
    off = 0
    for s in split_sizes:
        args.append(w0[off:off + s, :])                        # (E_k, H)
        off += s
    args.append(b0.reshape(1, -1))
    for l in range(1, L - 1):
        w, b = params[l]
        args.append(w)
        args.append(b.reshape(1, -1))
    wl, bl = params[-1]
    args.append(jnp.transpose(wl))                             # (1, H)
    args.append(bl.reshape(1, 1))
    return args


# ---------------------------------------------------------------------------
# MultiTasksReadout
# ---------------------------------------------------------------------------
class MultiTasksReadout:
    def __init__(self, tasks, emb_size, graph_type, num_fc=3, seed=0):
        self.tasks = tasks if isinstance(tasks, list) else [tasks]
        self.graph_type = graph_type
        self.emb_size = emb_size
        self.num_fc = num_fc
        if graph_type in ('lcg', 'lig'):
            self.v_splits = [emb_size, emb_size]       # pos / neg halves of v_emb
        else:
            self.v_splits = [emb_size]
        v_emb_size = sum(self.v_splits)

        key = jax.random.PRNGKey(seed)
        self.params = {}
        self.kernel_args = {}
        for task in self.tasks:
            key, sub = jax.random.split(key)
            if task == 'unsat_core':
                in_size, splits = emb_size, [emb_size]
            elif task == 'satisfiability':
                # pooled head consumes the already-concatenated (G, 2E) embedding
                in_size, splits = v_emb_size, [v_emb_size]
            else:  # maxsat
                in_size, splits = v_emb_size, self.v_splits
            p = init_mlp_params(sub, in_size, emb_size, 1, num_fc)
            self.params[task] = p
            self.kernel_args[task] = _prep_mlp_params(p, splits)

    def __call__(self, batch):
        if self.graph_type in ('lcg', 'lig'):
            # no jnp.concatenate of v_emb: both halves are streamed and the layer-0
            # weight is split inside the kernel.
            v_pieces = [batch['pos_l_emb'], batch['neg_l_emb']]
        else:
            v_pieces = [batch['v_emb']]

        results = {}
        want_max = 'maxsat' in self.tasks
        want_sat = 'satisfiability' in self.tasks
        if want_max or want_sat:
            # single fused streaming pass over v_emb serves both heads
            row_out, pool_out = _readout_call(
                v_pieces,
                row_args=self.kernel_args['maxsat'] if want_max else None,
                n_row=self.num_fc if want_max else 0,
                pool_args=self.kernel_args['satisfiability'] if want_sat else None,
                n_pool=self.num_fc if want_sat else 0,
                seg_lengths=batch['num_variables'] if want_sat else None)
            if want_max:
                results['maxsat'] = row_out
            if want_sat:
                results['satisfiability'] = pool_out
        if 'unsat_core' in self.tasks:
            row_out, _ = _readout_call(
                [batch['c_emb']],
                row_args=self.kernel_args['unsat_core'], n_row=self.num_fc,
                pool_args=None, n_pool=0, seg_lengths=None)
            results['unsat_core'] = row_out

        batch['output'] = []
        for task in self.tasks:
            batch[task] = results[task]
            batch['output'].append(results[task])
        # TODO(synk): `batch['g'].ndata.pop('emb')` is DGL graph-object bookkeeping
        # with no tensor compute; nothing to translate.
        return batch


# ---------------------------------------------------------------------------
# Demo / self-check
# ---------------------------------------------------------------------------
if __name__ == "__main__":
    emb_size = 32
    num_graphs = 2
    vars_per_graph = 8
    num_vars_total = num_graphs * vars_per_graph   # 16 literals per polarity
    num_clauses = 16

    key = jax.random.PRNGKey(0)
    k1, k2, k3 = jax.random.split(key, 3)
    batch = {
        'pos_l_emb': jax.random.normal(k1, (num_vars_total, emb_size), jnp.float32),
        'neg_l_emb': jax.random.normal(k2, (num_vars_total, emb_size), jnp.float32),
        'c_emb':     jax.random.normal(k3, (num_clauses, emb_size), jnp.float32),
        'num_variables': jnp.array([vars_per_graph] * num_graphs, jnp.int32),
    }

    model = MultiTasksReadout(
        tasks=['satisfiability', 'maxsat', 'unsat_core'],
        emb_size=emb_size, graph_type='lcg', num_fc=3)

    out_batch = model(batch)
    outs = jax.block_until_ready(out_batch['output'])

    # shape / range checks
    assert outs[0].shape == (num_graphs,)        # satisfiability per graph
    assert outs[1].shape == (num_vars_total,)    # maxsat per literal row
    assert outs[2].shape == (num_clauses,)       # unsat_core per clause
    assert all(bool(jnp.all((o >= 0.0) & (o <= 1.0))) for o in outs)

    # numerical check against a plain-JAX reference of the PyTorch forward
    def ref_mlp(x, params):
        h = x
        for l, (w, b) in enumerate(params):
            h = h @ w + b
            if l < len(params) - 1:
                h = jnp.maximum(h, 0.0)
        return jax.nn.sigmoid(h)[:, 0]

    v_emb = jnp.concatenate([batch['pos_l_emb'], batch['neg_l_emb']], axis=1)
    seg_ids = jnp.repeat(jnp.arange(num_graphs), vars_per_graph)
    pooled = (jax.ops.segment_sum(v_emb, seg_ids, num_segments=num_graphs)
              / float(vars_per_graph))
    ref_sat = ref_mlp(pooled, model.params['satisfiability'])
    ref_max = ref_mlp(v_emb, model.params['maxsat'])
    ref_uns = ref_mlp(batch['c_emb'], model.params['unsat_core'])
    assert bool(jnp.allclose(outs[0], ref_sat, atol=2e-5, rtol=2e-5))
    assert bool(jnp.allclose(outs[1], ref_max, atol=2e-5, rtol=2e-5))
    assert bool(jnp.allclose(outs[2], ref_uns, atol=2e-5, rtol=2e-5))

    print("KERNEL_OK")
</pallas_src>

<mosaic_0001>
module attributes {stable_mosaic.version = 11 : i64} {
  func.func @kernel(%arg0: i32, %arg1: memref<16x32xf32, #tpu.memory_space<vmem>>, %arg2: memref<16x32xf32, #tpu.memory_space<vmem>>, %arg3: memref<2x1xi32, #tpu.memory_space<vmem>>, %arg4: memref<2x1xi32, #tpu.memory_space<vmem>>, %arg5: memref<32x32xf32, #tpu.memory_space<vmem>>, %arg6: memref<32x32xf32, #tpu.memory_space<vmem>>, %arg7: memref<1x32xf32, #tpu.memory_space<vmem>>, %arg8: memref<32x32xf32, #tpu.memory_space<vmem>>, %arg9: memref<1x32xf32, #tpu.memory_space<vmem>>, %arg10: memref<1x32xf32, #tpu.memory_space<vmem>>, %arg11: memref<1x1xf32, #tpu.memory_space<vmem>>, %arg12: memref<1x16xf32, #tpu.memory_space<vmem>>, %arg13: memref<1x2x64xf32, #tpu.memory_space<vmem>>) attributes {dimension_semantics = [#tpu.dimension_semantics<parallel>], iteration_bounds = array<i64: 1>, scalar_prefetch = 0 : i64, scratch_operands = 0 : i64, tpu.core_type = #tpu.core_type<tc>, window_params = [{transform_indices = @transform_0, window_bounds = array<i64: 16, 32>}, {transform_indices = @transform_1, window_bounds = array<i64: 16, 32>}, {pipeline_mode = #tpu.pipeline_mode<synchronous>, transform_indices = @transform_2, window_bounds = array<i64: 2, 1>}, {pipeline_mode = #tpu.pipeline_mode<synchronous>, transform_indices = @transform_3, window_bounds = array<i64: 2, 1>}, {pipeline_mode = #tpu.pipeline_mode<synchronous>, transform_indices = @transform_4, window_bounds = array<i64: 32, 32>}, {pipeline_mode = #tpu.pipeline_mode<synchronous>, transform_indices = @transform_5, window_bounds = array<i64: 32, 32>}, {pipeline_mode = #tpu.pipeline_mode<synchronous>, transform_indices = @transform_6, window_bounds = array<i64: 1, 32>}, {pipeline_mode = #tpu.pipeline_mode<synchronous>, transform_indices = @transform_7, window_bounds = array<i64: 32, 32>}, {pipeline_mode = #tpu.pipeline_mode<synchronous>, transform_indices = @transform_8, window_bounds = array<i64: 1, 32>}, {pipeline_mode = #tpu.pipeline_mode<synchronous>, transform_indices = @transform_9, window_bounds = array<i64: 1, 32>}, {pipeline_mode = #tpu.pipeline_mode<synchronous>, transform_indices = @transform_10, window_bounds = array<i64: 1, 1>}, {transform_indices = @transform_11, window_bounds = array<i64: 1, 16>}, {transform_indices = @transform_12, window_bounds = array<i64: 1, 2, 64>}]} {
    %c0 = arith.constant 0 : index
    %c0_0 = arith.constant 0 : index
    %0 = vector.load %arg1[%c0, %c0_0] : memref<16x32xf32, #tpu.memory_space<vmem>>, vector<16x32xf32>
    %c0_1 = arith.constant 0 : index
    %c0_2 = arith.constant 0 : index
    %1 = vector.load %arg2[%c0_1, %c0_2] : memref<16x32xf32, #tpu.memory_space<vmem>>, vector<16x32xf32>
    %c0_3 = arith.constant 0 : index
    %c0_4 = arith.constant 0 : index
    %2 = vector.load %arg7[%c0_3, %c0_4] : memref<1x32xf32, #tpu.memory_space<vmem>>, vector<1x32xf32>
    %c0_5 = arith.constant 0 : index
    %c0_6 = arith.constant 0 : index
    %3 = vector.load %arg5[%c0_5, %c0_6] : memref<32x32xf32, #tpu.memory_space<vmem>>, vector<32x32xf32>
    %cst = arith.constant dense<0.000000e+00> : vector<16x32xf32>
    %4 = tpu.matmul %0, %3, %cst {dimension_numbers = #tpu.dot_dimension_numbers<[1], [0], [0], [1], [0, 0, 1, 1], [], []>} : vector<16x32xf32>, vector<32x32xf32>, vector<16x32xf32> -> vector<16x32xf32>
    %5 = vector.broadcast %2 : vector<1x32xf32> to vector<16x32xf32>
    %6 = arith.addf %5, %4 : vector<16x32xf32>
    %c0_7 = arith.constant 0 : index
    %c0_8 = arith.constant 0 : index
    %7 = vector.load %arg6[%c0_7, %c0_8] : memref<32x32xf32, #tpu.memory_space<vmem>>, vector<32x32xf32>
    %cst_9 = arith.constant dense<0.000000e+00> : vector<16x32xf32>
    %8 = tpu.matmul %1, %7, %cst_9 {dimension_numbers = #tpu.dot_dimension_numbers<[1], [0], [0], [1], [0, 0, 1, 1], [], []>} : vector<16x32xf32>, vector<32x32xf32>, vector<16x32xf32> -> vector<16x32xf32>
    %9 = arith.addf %6, %8 : vector<16x32xf32>
    %cst_10 = arith.constant 0.000000e+00 : f32
    %10 = vector.broadcast %cst_10 : f32 to vector<16x32xf32>
    %11 = arith.maximumf %9, %10 : vector<16x32xf32>
    %c0_11 = arith.constant 0 : index
    %c0_12 = arith.constant 0 : index
    %12 = vector.load %arg8[%c0_11, %c0_12] : memref<32x32xf32, #tpu.memory_space<vmem>>, vector<32x32xf32>
    %cst_13 = arith.constant dense<0.000000e+00> : vector<16x32xf32>
    %13 = tpu.matmul %11, %12, %cst_13 {dimension_numbers = #tpu.dot_dimension_numbers<[1], [0], [0], [1], [0, 0, 1, 1], [], []>} : vector<16x32xf32>, vector<32x32xf32>, vector<16x32xf32> -> vector<16x32xf32>
    %c0_14 = arith.constant 0 : index
    %c0_15 = arith.constant 0 : index
    %14 = vector.load %arg9[%c0_14, %c0_15] : memref<1x32xf32, #tpu.memory_space<vmem>>, vector<1x32xf32>
    %15 = vector.broadcast %14 : vector<1x32xf32> to vector<16x32xf32>
    %16 = arith.addf %13, %15 : vector<16x32xf32>
    %cst_16 = arith.constant 0.000000e+00 : f32
    %17 = vector.broadcast %cst_16 : f32 to vector<16x32xf32>
    %18 = arith.maximumf %16, %17 : vector<16x32xf32>
    %c0_17 = arith.constant 0 : index
    %c0_18 = arith.constant 0 : index
    %19 = vector.load %arg10[%c0_17, %c0_18] : memref<1x32xf32, #tpu.memory_space<vmem>>, vector<1x32xf32>
    %cst_19 = arith.constant dense<0.000000e+00> : vector<1x16xf32>
    %20 = tpu.matmul %19, %18, %cst_19 {dimension_numbers = #tpu.dot_dimension_numbers<[1], [1], [0], [0], [0, 0, 1, 0], [], []>} : vector<1x32xf32>, vector<16x32xf32>, vector<1x16xf32> -> vector<1x16xf32>
    %c0_20 = arith.constant 0 : index
    %c0_21 = arith.constant 0 : index
    %21 = vector.load %arg11[%c0_20, %c0_21] : memref<1x1xf32, #tpu.memory_space<vmem>>, vector<1x1xf32>
    %22 = vector.broadcast %21 : vector<1x1xf32> to vector<1x16xf32>
    %23 = arith.addf %20, %22 : vector<1x16xf32>
    %24 = arith.negf %23 : vector<1x16xf32>
    %25 = math.exp %24 : vector<1x16xf32>
    %cst_22 = arith.constant 1.000000e+00 : f32
    %26 = vector.broadcast %cst_22 : f32 to vector<1x16xf32>
    %27 = arith.addf %26, %25 : vector<1x16xf32>
    %28 = arith.divf %26, %27 : vector<1x16xf32>
    %c0_23 = arith.constant 0 : index
    %c0_24 = arith.constant 0 : index
    %29 = vector.load %arg12[%c0_23, %c0_24] : memref<1x16xf32, #tpu.memory_space<vmem>>, vector<1x16xf32>
    tpu.vector_store %arg12[%c0_23, %c0_24], %28 {strides = array<i32>} : memref<1x16xf32, #tpu.memory_space<vmem>>, vector<1x16xf32>,
    %30 = tpu.iota {dimensions = array<i32: 1>} : vector<1x16xi32>
    %c16_i32 = arith.constant 16 : i32
    %31 = arith.muli %arg0, %c16_i32 : i32
    %32 = vector.broadcast %31 : i32 to vector<1x16xi32>
    %33 = arith.addi %30, %32 : vector<1x16xi32>
    %c0_25 = arith.constant 0 : index
    %c0_26 = arith.constant 0 : index
    %34 = vector.load %arg3[%c0_25, %c0_26] : memref<2x1xi32, #tpu.memory_space<vmem>>, vector<2x1xi32>
    %35 = vector.broadcast %33 : vector<1x16xi32> to vector<2x16xi32>
    %36 = vector.broadcast %34 : vector<2x1xi32> to vector<2x16xi32>
    %37 = arith.cmpi sge, %35, %36 : vector<2x16xi32>
    %c0_27 = arith.constant 0 : index
    %c0_28 = arith.constant 0 : index
    %38 = vector.load %arg4[%c0_27, %c0_28] : memref<2x1xi32, #tpu.memory_space<vmem>>, vector<2x1xi32>
    %39 = vector.broadcast %33 : vector<1x16xi32> to vector<2x16xi32>
    %40 = vector.broadcast %38 : vector<2x1xi32> to vector<2x16xi32>
    %41 = arith.cmpi slt, %39, %40 : vector<2x16xi32>
    %42 = arith.andi %37, %41 : vector<2x16xi1>
    %43 = arith.extui %42 : vector<2x16xi1> to vector<2x16xi32>
    %44 = arith.sitofp %43 : vector<2x16xi32> to vector<2x16xf32>
    %45 = tpu.iota {dimensions = array<i32: 0>} : vector<16x1xi32>
    %c16_i32_29 = arith.constant 16 : i32
    %46 = arith.muli %arg0, %c16_i32_29 : i32
    %47 = vector.broadcast %46 : i32 to vector<16x1xi32>
    %48 = arith.addi %45, %47 : vector<16x1xi32>
    %c16_i32_30 = arith.constant 16 : i32
    %49 = vector.broadcast %c16_i32_30 : i32 to vector<16x1xi32>
    %50 = arith.cmpi slt, %48, %49 : vector<16x1xi32>
    %cst_31 = arith.constant 0.000000e+00 : f32
    %51 = vector.shape_cast %50 : vector<16x1xi1> to vector<16x1xi1>
    %52 = vector.broadcast %51 : vector<16x1xi1> to vector<16x32xi1>
    %53 = vector.broadcast %cst_31 : f32 to vector<16x32xf32>
    %54 = arith.select %52, %0, %53 : vector<16x32xi1>, vector<16x32xf32>
    %cst_32 = arith.constant dense<0.000000e+00> : vector<2x32xf32>
    %55 = tpu.matmul %44, %54, %cst_32 {dimension_numbers = #tpu.dot_dimension_numbers<[1], [0], [0], [1], [0, 0, 1, 1], [], []>} : vector<2x16xf32>, vector<16x32xf32>, vector<2x32xf32> -> vector<2x32xf32>
    %cst_33 = arith.constant 0.000000e+00 : f32
    %56 = vector.shape_cast %50 : vector<16x1xi1> to vector<16x1xi1>
    %57 = vector.broadcast %56 : vector<16x1xi1> to vector<16x32xi1>
    %58 = vector.broadcast %cst_33 : f32 to vector<16x32xf32>
    %59 = arith.select %57, %1, %58 : vector<16x32xi1>, vector<16x32xf32>
    %cst_34 = arith.constant dense<0.000000e+00> : vector<2x32xf32>
    %60 = tpu.matmul %44, %59, %cst_34 {dimension_numbers = #tpu.dot_dimension_numbers<[1], [0], [0], [1], [0, 0, 1, 1], [], []>} : vector<2x16xf32>, vector<16x32xf32>, vector<2x32xf32> -> vector<2x32xf32>
    %61 = tpu.concatenate %55, %60 in 1 : vector<2x32xf32>, vector<2x32xf32> -> vector<2x64xf32>
    %62 = vector.shape_cast %61 : vector<2x64xf32> to vector<1x2x64xf32>
    %c0_35 = arith.constant 0 : index
    %c0_36 = arith.constant 0 : index
    %c0_37 = arith.constant 0 : index
    %63 = vector.load %arg13[%c0_35, %c0_36, %c0_37] : memref<1x2x64xf32, #tpu.memory_space<vmem>>, vector<1x2x64xf32>
    tpu.vector_store %arg13[%c0_35, %c0_36, %c0_37], %62 {strides = array<i32>} : memref<1x2x64xf32, #tpu.memory_space<vmem>>, vector<1x2x64xf32>,
    return
  }
  func.func @transform_0(%arg0: i32) -> (i32, i32) {
    %c0_i32 = arith.constant 0 : i32
    %c0_i32_0 = arith.constant 0 : i32
    return %arg0, %c0_i32 : i32, i32
  }
  func.func @transform_1(%arg0: i32) -> (i32, i32) {
    %c0_i32 = arith.constant 0 : i32
    %c0_i32_0 = arith.constant 0 : i32
    return %arg0, %c0_i32 : i32, i32
  }
  func.func @transform_2(%arg0: i32) -> (i32, i32) {
    %c0_i32 = arith.constant 0 : i32
    %c0_i32_0 = arith.constant 0 : i32
    %c0_i32_1 = arith.constant 0 : i32
    return %c0_i32, %c0_i32_0 : i32, i32
  }
  func.func @transform_3(%arg0: i32) -> (i32, i32) {
    %c0_i32 = arith.constant 0 : i32
    %c0_i32_0 = arith.constant 0 : i32
    %c0_i32_1 = arith.constant 0 : i32
    return %c0_i32, %c0_i32_0 : i32, i32
  }
  func.func @transform_4(%arg0: i32) -> (i32, i32) {
    %c0_i32 = arith.constant 0 : i32
    %c0_i32_0 = arith.constant 0 : i32
    %c0_i32_1 = arith.constant 0 : i32
    return %c0_i32, %c0_i32_0 : i32, i32
  }
  func.func @transform_5(%arg0: i32) -> (i32, i32) {
    %c0_i32 = arith.constant 0 : i32
    %c0_i32_0 = arith.constant 0 : i32
    %c0_i32_1 = arith.constant 0 : i32
    return %c0_i32, %c0_i32_0 : i32, i32
  }
  func.func @transform_6(%arg0: i32) -> (i32, i32) {
    %c0_i32 = arith.constant 0 : i32
    %c0_i32_0 = arith.constant 0 : i32
    %c0_i32_1 = arith.constant 0 : i32
    return %c0_i32, %c0_i32_0 : i32, i32
  }
  func.func @transform_7(%arg0: i32) -> (i32, i32) {
    %c0_i32 = arith.constant 0 : i32
    %c0_i32_0 = arith.constant 0 : i32
    %c0_i32_1 = arith.constant 0 : i32
    return %c0_i32, %c0_i32_0 : i32, i32
  }
  func.func @transform_8(%arg0: i32) -> (i32, i32) {
    %c0_i32 = arith.constant 0 : i32
    %c0_i32_0 = arith.constant 0 : i32
    %c0_i32_1 = arith.constant 0 : i32
    return %c0_i32, %c0_i32_0 : i32, i32
  }
  func.func @transform_9(%arg0: i32) -> (i32, i32) {
    %c0_i32 = arith.constant 0 : i32
    %c0_i32_0 = arith.constant 0 : i32
    %c0_i32_1 = arith.constant 0 : i32
    return %c0_i32, %c0_i32_0 : i32, i32
  }
  func.func @transform_10(%arg0: i32) -> (i32, i32) {
    %c0_i32 = arith.constant 0 : i32
    %c0_i32_0 = arith.constant 0 : i32
    %c0_i32_1 = arith.constant 0 : i32
    return %c0_i32, %c0_i32_0 : i32, i32
  }
  func.func @transform_11(%arg0: i32) -> (i32, i32) {
    %c0_i32 = arith.constant 0 : i32
    %c0_i32_0 = arith.constant 0 : i32
    return %c0_i32, %arg0 : i32, i32
  }
  func.func @transform_12(%arg0: i32) -> (i32, i32, i32) {
    %c0_i32 = arith.constant 0 : i32
    %c0_i32_0 = arith.constant 0 : i32
    %c0_i32_1 = arith.constant 0 : i32
    return %arg0, %c0_i32, %c0_i32_0 : i32, i32, i32
  }
}

</mosaic_0001>

<bundles_post_ra>
// kernel: tpu_custom_call.1
= control target key start
LH: loop header
LB: loop body
LE: loop exit
PB: predicated region body
PF: predicated region fallthrough
CT: control target
= control target key end

     0   :  { %s1221_s0 = inlined_call_operand.hbm [shape: f32[16,32], index: 0, kind: input, shape index: {}]   ;;  %s1222_s1 = inlined_call_operand.hbm [shape: f32[16,32], index: 1, kind: input, shape index: {}]   ;;  %s1223_s2 = inlined_call_operand.vmem [shape: s32[2,1], index: 2, kind: input, shape index: {}]   ;;  %s1224_s3 = inlined_call_operand.vmem [shape: s32[2,1], index: 3, kind: input, shape index: {}]   ;;  %s1225_s4 = inlined_call_operand.hbm [shape: f32[32,32], index: 4, kind: input, shape index: {}]   ;;  %s1226_s5 = inlined_call_operand.hbm [shape: f32[32,32], index: 5, kind: input, shape index: {}]   ;;  %s1227_s6 = inlined_call_operand.vmem [shape: f32[1,32], index: 6, kind: input, shape index: {}]   ;;  %s1228_s7 = inlined_call_operand.vmem [shape: f32[32,32], index: 7, kind: input, shape index: {}]   ;;  %s1229_s8 = inlined_call_operand.vmem [shape: f32[1,32], index: 8, kind: input, shape index: {}]   ;;  %s1230_s9 = inlined_call_operand.vmem [shape: f32[1,32], index: 9, kind: input, shape index: {}]   ;;  %s1231_s10 = inlined_call_operand.<no memory space> [shape: f32[1,1], index: 10, kind: input, shape index: {}]   ;;  %s1232_s11 = inlined_call_operand.hbm [shape: f32[1,16], index: 11, kind: output, shape index: {0}]   ;;  %s1233_s12 = inlined_call_operand.hbm [shape: f32[1,2,64], index: 12, kind: output, shape index: {1}]  }
   0x1   :  { %v18_v0 = vstv %s1231_s10 }
   0x2   :  { %19 = vst [vmem:[#allocation2] sm:$0x1] %v18_v0 }
   0x3   :  { %20 = vsyncpa [#allocation4], 0 }
   0x4   :  { %21 = vsyncpa [#allocation7], 0 }
   0x5   :  { %22 = vsyncpa [#allocation10], 0 }
   0x6   :  { %23 = vsyncpa [#allocation5], 0 }
   0x7   :  { %24 = vsyncpa [#allocation13], 0  ;;  %s989_s23 = smov [#allocation6]   ;;  %s990_s25 = smov [#allocation3]  }
   0x8   :  { %s42_s24 = sshll.u32 %s989_s23, 4  ;;  %s30_s26 = sshll.u32 %s990_s25, 4  ;;  %s43_s24 = int_to_ptr.vmem [resolvable:$true] %s42_s24  ;;  %s1070_s26 = int_to_ptr.vmem [resolvable:$true] %s30_s26 }
   0x9   :  { %s847_s29 = scalar_lea.hbm %s1222_s1, 256 }
   0xa   :  { %p848_p0 = scmp.ne.s32.totalorder %s1222_s1, %s847_s29  ;;  %p851_p1 = scmp.lt.u32.totalorder %s847_s29, %s1222_s1 }
   0xc   :  { %p853_p2 = pnand %p851_p1, %p848_p0 }
   0xe   :  { %856 = shalt.err (!%p853_p2)
}
   0xf   :  { %s857_s15 = scalar_lea.vmem %s43_s24, 256  ;;  %p862_p4 = scmp.lt.s32.totalorder %s43_s24, %s43_s24 }
  0x10   :  { %p858_p3 = scmp.ne.s32.totalorder %s43_s24, %s857_s15  ;;  %p863_p5 = scmp.lt.s32.totalorder %s857_s15, %s857_s15 }
  0x12   :  { %p864_p6 = por %p863_p5, %p862_p4 }
  0x14   :  { %p865_p7 = pnand %p864_p6, %p858_p3 }
  0x16   :  { %868 = shalt.err (!%p865_p7)
}
  0x17   :  { %s991_s16 = smov 128   ;;  %s992_s17 = smov 8  }
  0x18   :  { %48 = dma.hbm_to_vmem [thread:$0]  %s1222_s1, 256, %s43_s24, [#allocation7], %s991_s16, %s991_s16, %s992_s17  }
  0x19   :  { %s869_s22 = scalar_lea.hbm %s1221_s0, 256 }
  0x1a   :  { %p870_p8 = scmp.ne.s32.totalorder %s1221_s0, %s869_s22  ;;  %p873_p9 = scmp.lt.u32.totalorder %s869_s22, %s1221_s0 }
  0x1c   :  { %p875_p10 = pnand %p873_p9, %p870_p8 }
  0x1e   :  { %878 = shalt.err (!%p875_p10)
}
  0x1f   :  { %s879_s29 = scalar_lea.vmem %s1070_s26, 256  ;;  %p884_p12 = scmp.lt.s32.totalorder %s1070_s26, %s1070_s26 }
  0x20   :  { %p880_p11 = scmp.ne.s32.totalorder %s1070_s26, %s879_s29  ;;  %p885_p13 = scmp.lt.s32.totalorder %s879_s29, %s879_s29 }
  0x22   :  { %p886_p0 = por %p885_p13, %p884_p12 }
  0x24   :  { %p887_p1 = pnand %p886_p0, %p880_p11 }
  0x26   :  { %890 = shalt.err (!%p887_p1)
}
  0x27   :  { %36 = dma.hbm_to_vmem [thread:$0]  %s1221_s0, 256, %s1070_s26, [#allocation4], %s991_s16, %s991_s16, %s992_s17  }
  0x28   :  { %s993_s30 = smov [#allocation8]   ;;  %s994_s10 = smov [#allocation9]  }
  0x29   :  { %s58_s13 = sshll.u32 %s993_s30, 4  ;;  %s70_s14 = sshll.u32 %s994_s10, 4  ;;  %s59_s13 = int_to_ptr.vmem [resolvable:$true] %s58_s13  ;;  %s1107_s14 = int_to_ptr.vmem [resolvable:$true] %s70_s14 }
  0x2a   :  { %s891_s19 = scalar_lea.hbm %s1225_s4, 512 }
  0x2b   :  { %p892_p2 = scmp.ne.s32.totalorder %s1225_s4, %s891_s19  ;;  %p895_p3 = scmp.lt.u32.totalorder %s891_s19, %s1225_s4 }
  0x2d   :  { %p897_p4 = pnand %p895_p3, %p892_p2 }
  0x2f   :  { %900 = shalt.err (!%p897_p4)
}
  0x30   :  { %s901_s0 = scalar_lea.vmem %s59_s13, 512  ;;  %p906_p6 = scmp.lt.s32.totalorder %s59_s13, %s59_s13 }
  0x31   :  { %p902_p5 = scmp.ne.s32.totalorder %s59_s13, %s901_s0  ;;  %p907_p7 = scmp.lt.s32.totalorder %s901_s0, %s901_s0 }
  0x33   :  { %p908_p8 = por %p907_p7, %p906_p6 }
  0x35   :  { %p909_p9 = pnand %p908_p8, %p902_p5 }
  0x37   :  { %912 = shalt.err (!%p909_p9)
}
  0x38   :  { %64 = dma.hbm_to_vmem [thread:$0]  %s1225_s4, 512, %s59_s13, [#allocation7], %s991_s16, %s991_s16, %s992_s17  }
  0x39   :  { %s913_s29 = scalar_lea.hbm %s1226_s5, 512 }
  0x3a   :  { %p914_p10 = scmp.ne.s32.totalorder %s1226_s5, %s913_s29  ;;  %p917_p11 = scmp.lt.u32.totalorder %s913_s29, %s1226_s5 }
  0x3c   :  { %p919_p12 = pnand %p917_p11, %p914_p10 }
  0x3e   :  { %922 = shalt.err (!%p919_p12)
}
  0x3f   :  { %s923_s15 = scalar_lea.vmem %s1107_s14, 512  ;;  %p928_p0 = scmp.lt.s32.totalorder %s1107_s14, %s1107_s14 }
  0x40   :  { %p924_p13 = scmp.ne.s32.totalorder %s1107_s14, %s923_s15  ;;  %p929_p1 = scmp.lt.s32.totalorder %s923_s15, %s923_s15 }
  0x42   :  { %p930_p2 = por %p929_p1, %p928_p0 }
  0x44   :  { %p931_p3 = pnand %p930_p2, %p924_p13 }
  0x46   :  { %934 = shalt.err (!%p931_p3)
}
  0x47   :  { %76 = dma.hbm_to_vmem [thread:$0]  %s1226_s5, 512, %s1107_s14, [#allocation10], %s991_s16, %s991_s16, %s992_s17  }
  0x48   :  { %979 = dma.done.wait [#allocation4], 256  }
  0x49   :  { %980 = vsyncadd [#allocation4], 4294967040 }
  0x4a   :  { %981 = dma.done.wait [#allocation7], 768  }
  0x4b   :  { %982 = vsyncadd [#allocation7], 4294966528 }
  0x4c   :  { %983 = dma.done.wait [#allocation10], 512  }
  0x4d   :  { %984 = vsyncadd [#allocation10], 4294966784  ;;  %vm108_vm0 = vcmask 261120   ;;  %v104_v1 = vld [vmem:[#allocation8] sm:$0xff]  ;;  %v105_v2 = vld [vmem:[#allocation8 + $0x8] sm:$0xff]  ;;  %v995_v26 = vmov 0   ;;  %v388_v35 = vlaneseq }
  0x4e   :  { %v106_v3 = vld [vmem:[#allocation8 + $0x10] sm:$0xff]  ;;  %v790_v4 = vpack.c.bf16 %v105_v2, %v104_v1  ;;  %v107_v5 = vld [vmem:[#allocation8 + $0x18] sm:$0xff]  ;;  %v99_v6 = vld [vmem:[#allocation3] sm:$0xff]  ;;  %841 = vset.pattern.permute.xlu0 %v995_v26  ;;  %842 = vset.pattern.permute.xlu1 %v995_v26  ;;  %v996_v37 = vmov 0.0|0.0   ;;  %vm997_vm1 = vmmov 0   ;;  %v998_v39 = vmov 0.0  }
  0x4f   :  { %v100_v7 = vld [vmem:[#allocation3 + $0x8] sm:$0xff]  ;;  %v794_v8 = vpack.c.bf16 %v107_v5, %v106_v3  ;;  %744 = vmatprep.mubr.msk.f32.mxu0 %vm108_vm0, %v99_v6  ;;  %v198_v10 = vld [vmem:[#allocation9] sm:$0xff]  ;;  %v1145_v12 = vld [vmem:[#allocation6] sm:$0xff]  ;;  %v480_v38 = vand.u32 127, %v388_v35  ;;  %vm510_vm5 = vcmask 130048   ;;  %v389_v54 = vshrl.u32 %v388_v35, 7 }
  0x50   :  { %v819_v9 = vpack.c.bf16 %v100_v7, %v99_v6  ;;  %v199_v11 = vld [vmem:[#allocation9 + $0x8] sm:$0xff]  ;;  %791 = vmatprep.subr.bf16.mxu0 %v790_v4  ;;  %v1147_v13 = vld [vmem:[#allocation6 + $0x8] sm:$0xff]  ;;  %v200_v19 = vld [vmem:[#allocation9 + $0x10] sm:$0xff]  ;;  %vm477_vm7 = vcmask 122880  }
  0x51   :  { %793 = vmatpush3.bf16.msra.mxu0 %v790_v4  ;;  %v822_v14 = vpack.c.bf16 %v1147_v13, %v1145_v12  ;;  %v287_v15 = vld [vmem:[%s1228_s7] sm:$0xff]  ;;  %v288_v16 = vld [vmem:[%s1228_s7 + $0x8] sm:$0xff]  ;;  %v798_v17 = vpack.c.bf16 %v199_v11, %v198_v10  ;;  %v289_v22 = vld [vmem:[%s1228_s7 + $0x10] sm:$0xff]  ;;  %v390_v55 = vsub.s32 0, %v389_v54 }
  0x52   :  { %795 = vmatprep.subr.bf16.mxu0 %v794_v8  ;;  %v806_v18 = vpack.c.bf16 %v288_v16, %v287_v15  ;;  %v201_v20 = vld [vmem:[#allocation9 + $0x18] sm:$0xff]  ;;  %vm816_vm6 = vmpackc.low %vm108_vm0, %vm108_vm0 }
  0x53   :  { %v802_v21 = vpack.c.bf16 %v201_v20, %v200_v19  ;;  %v290_v23 = vld [vmem:[%s1228_s7 + $0x18] sm:$0xff]  ;;  %v484_v25 = vld [vmem:[%s1223_s2] sm:$0x3] }
  0x54   :  { %807 = vmatprep.subr.bf16.mxu1 %v806_v18  ;;  %v810_v24 = vpack.c.bf16 %v290_v23, %v289_v22  ;;  %486 = vperm.xlu0 %841, %v484_v25   ;;  %v489_v27 = vld [vmem:[%s1224_s3] sm:$0x3] }
  0x55   :  { %797 = vmatpush3.bf16.msra.mxu0 %v794_v8  ;;  %809 = vmatpush3.bf16.msra.mxu1 %v806_v18  ;;  %v696_v28 = vld [vmem:[%s1227_s6] ss:$0 sm:$0xff] }
  0x56   :  { %799 = vmatprep.subr.bf16.mxu0 %v798_v17  ;;  %811 = vmatprep.subr.bf16.mxu1 %v810_v24  ;;  %v382_v42 = vld [vmem:[#allocation2] sm:$0x1] }
  0x57   :  { %385 = vperm.xlu1 %842, %v382_v42   ;;  %v699_v43 = vld [vmem:[%s1229_s8] ss:$0 sm:$0xff]  ;;  %s999_s8 = smov 32  }
  0x58   :  { %745 = vmatmul.mubr.msk.f32.vlgmr.msra.gmra.mrb[0].mxu0 %vm108_vm0, %v100_v7  ;;  %491 = vperm.xlu0 %841, %v489_v27   ;;  %v381_v51 = vld [vmem:[%s1230_s9] sm:$0x1]  ;;  %s1000_s9 = smov [#allocation11]  }
  0x59   :  { %801 = vmatpush3.bf16.msra.mxu0 %v798_v17  ;;  %755 = vmatprep.mubr.msk.f32.mxu0 %vm108_vm0, %v1145_v12  ;;  %s669_s28 = sshll.u32 %s1000_s9, 4  ;;  %s670_s28 = int_to_ptr.vmem [resolvable:$true] %s669_s28 }
  0x5a   :  { %803 = vmatprep.subr.bf16.mxu0 %v802_v21  ;;  %813 = vmatpush3.bf16.msra.mxu1 %v810_v24  ;;  %s935_s29 = scalar_lea.vmem %s670_s28, 16  ;;  %s939_s1 = scalar_lea.vmem %s670_s28, 32 }
  0x5b   :  { %814 = vmatprep.subr.bf16.mxu1 %v996_v37  ;;  %p936_p4 = scmp.ne.s32.totalorder %s670_s28, %s935_s29  ;;  %p940_p5 = scmp.lt.s32.totalorder %s670_s28, %s670_s28 }
  0x5c   :  { %p941_p6 = scmp.lt.s32.totalorder %s939_s1, %s935_s29 }
  0x5d   :  { %805 = vmatpush3.bf16.msra.mxu0 %v802_v21 }
  0x5e   :  { %818 = vmatprep.subr.bf16.mxu0 %v996_v37  ;;  %p942_p7 = por %p941_p6, %p940_p5 }
  0x60   :  { %756 = vmatmul.mubr.msk.f32.vlgmr.msra.gmra.mrb[0].mxu0 %vm108_vm0, %v1147_v13  ;;  %p943_p8 = pnand %p942_p7, %p936_p4 }
  0x61   :  { %820 = vmatpush3.bf16.msra.mxu0 %v819_v9  ;;  %780 = vmatprep.mubr.msk.f32.mxu0 %vm997_vm1, %v998_v39 }
  0xd3   :  { %v487_v36 = vpop.permute.xlu0 %486 }
  0xd4   :  { %vm488_vm2 = vcmp.ge.s32.totalorder %v480_v38, %v487_v36 }
  0xd6   :  { %v386_v56 = vpop.permute.xlu1 %385 }
  0xd7   :  { %v492_v40 = vpop.permute.xlu0 %491  ;;  %v391_v57 = vrot.slane %v386_v56, %v390_v55 }
  0xd8   :  { %vm493_vm3 = vcmp.lt.s32.totalorder %v480_v38, %v492_v40 }
  0xd9   :  { %vm494_vm4 = vmand %vm488_vm2, %vm493_vm3 }
  0xda   :  { %v706_v41 = vsel %vm494_vm4, 1.0, %v998_v39 }
  0xdb   :  { %781 = vmatmul.mubr.msk.f32.vlgmr.msra.gmra.mrb[2].mxu0 %vm510_vm5, %v706_v41 }
 0x133   :  { %v757_v29 = vpop.f32.mrb[0].mxu0 }
 0x134   :  { %v824_v30 = vadd.f32 %v757_v29, %v696_v28  ;;  %v274_v31 = vpop.f32.mrb[1].mxu0 }
 0x135   :  { %v825_v32 = vadd.f32 %v696_v28, %v274_v31 }
 0x136   :  { %v286_v34 = vmax.f32 %v824_v30, 0.0 }
 0x137   :  { %v285_v33 = vmax.f32 %v825_v32, 0.0 }
 0x139   :  { %766 = vmatprep.mubr.msk.f32.mxu1 %vm108_vm0, %v285_v33 }
 0x13a   :  { %767 = vmatmul.mubr.msk.f32.vlgmr.msra.gmra.mrb[0].mxu1 %vm108_vm0, %v286_v34 }
 0x13b   :  { %773 = vmatprep.mubr.msk.f32.mxu1 %vm997_vm1, %v998_v39 }
 0x1ae   :  { %v580_v52 = vpop.f32.mrb[2].mxu0 }
 0x1af   :  { %v782_v53 = vpop.f32.mrb[3].mxu0 }
 0x20d   :  { %v768_v44 = vpop.f32.mrb[0].mxu1 }
 0x20e   :  { %v376_v45 = vadd.f32 %v768_v44, %v699_v43  ;;  %v370_v46 = vpop.f32.mrb[1].mxu1 }
 0x20f   :  { %v371_v47 = vadd.f32 %v699_v43, %v370_v46 }
 0x210   :  { %v380_v48 = vmax.f32 %v376_v45, 0.0 }
 0x211   :  { %v379_v49 = vmax.f32 %v371_v47, 0.0 }
 0x213   :  { %v815_v50 = vpack.c.bf16 %v380_v48, %v379_v49 }
 0x215   :  { %817 = vmatpush3.bf16.xpose.msk.msra.mxu1 %vm816_vm6, %v815_v50 }
 0x216   :  { %821 = vmatprep.subr.bf16.mxu1 %v996_v37 }
 0x21c   :  { %774 = vmatmul.mubr.msk.f32.vlgmr.msra.gmra.mrb[2].mxu1 %vm108_vm0, %v381_v51 }
 0x21d   :  { %823 = vmatpush3.bf16.msra.mxu1 %v822_v14  ;;  %787 = vmatprep.mubr.msk.f32.mxu1 %vm997_vm1, %v998_v39 }
 0x220   :  { %788 = vmatmul.mubr.msk.f32.vlgmr.msra.gmra.mrb[4].mxu1 %vm510_vm5, %v706_v41 }
 0x2ef   :  { %v467_v58 = vpop.f32.mrb[2].mxu1 }
 0x2f0   :  { %v468_v59 = vadd.f32 %v467_v58, %v391_v57  ;;  %v775_v60 = vpop.f32.mrb[3].mxu1 }
 0x2f2   :  { %v705_v61 = vmul.f32 -1.442695, %v468_v59 }
 0x2f3   :  { %v652_v62 = vpop.f32.mrb[4].mxu1 }
 0x2f4   :  { %843 = vpow2.f32 %v705_v61  ;;  %657 = vrot.lane.b32.xlu1 %v652_v62, %s999_s8  ;;  %v789_v63 = vpop.f32.mrb[5].mxu1 }
 0x2fe   :  { %v844_v0 = vpop.eup %843 }
 0x2ff   :  { %v474_v1 = vadd.f32 1.0, %v844_v0 }
 0x301   :  { %845 = vrcp.f32 %v474_v1 }
 0x30b   :  { %v846_v2 = vpop.eup %845 }
 0x30c   :  { %478 = vst.msk [vmem:[#allocation11] sm:$0x1] %vm477_vm7, %v846_v2 }
 0x30d   :  { %946 = shalt.err (!%p943_p8)
}
 0x30e   :  { %s947_s10 = scalar_lea.hbm %s1232_s11, 16 }
 0x30f   :  { %p948_p9 = scmp.ne.s32.totalorder %s1232_s11, %s947_s10  ;;  %p951_p10 = scmp.lt.u32.totalorder %s947_s10, %s1232_s11 }
 0x311   :  { %p953_p11 = pnand %p951_p10, %p948_p9 }
 0x313   :  { %956 = shalt.err (!%p953_p11)
}
 0x314   :  { %672 = dma.vmem_to_hbm [thread:$0]  %s670_s28, 16, %s1232_s11, [#allocation5]   ;;  %vm661_vm8 = vcmask 517120  }
 0x315   :  { %s1001_s14 = smov [#allocation12]  }
 0x316   :  { %s679_s18 = sshll.u32 %s1001_s14, 4  ;;  %s680_s18 = int_to_ptr.vmem [resolvable:$true] %s679_s18 }
 0x317   :  { %s957_s19 = scalar_lea.vmem %s680_s18, 32  ;;  %p962_p13 = scmp.lt.s32.totalorder %s680_s18, %s680_s18 }
 0x318   :  { %p958_p12 = scmp.ne.s32.totalorder %s680_s18, %s957_s19  ;;  %p963_p0 = scmp.lt.s32.totalorder %s957_s19, %s957_s19 }
 0x31a   :  { %p964_p1 = por %p963_p0, %p962_p13 }
 0x31c   :  { %p965_p2 = pnand %p964_p1, %p958_p12 }
 0x366   :  { %v658_v3 = vpop.permute.xlu1 %657 }
 0x367   :  { %v660_v4 = vsel %vm108_vm0, %v580_v52, %v658_v3 }
 0x368   :  { %662 = vst.msk [vmem:[#allocation12] sm:$0x3] %vm661_vm8, %v660_v4 }
 0x369   :  { %968 = shalt.err (!%p965_p2)
}
 0x36a   :  { %s969_s22 = scalar_lea.hbm %s1233_s12, 32 }
 0x36b   :  { %p970_p3 = scmp.ne.s32.totalorder %s1233_s12, %s969_s22  ;;  %p973_p4 = scmp.lt.u32.totalorder %s969_s22, %s1233_s12 }
 0x36d   :  { %p975_p5 = pnand %p973_p4, %p970_p3 }
 0x36f   :  { %978 = shalt.err (!%p975_p5)
}
 0x370   :  { %682 = dma.vmem_to_hbm [thread:$0]  %s680_s18, 32, %s1233_s12, [#allocation13]  }
 0x371   :  { %985 = dma.done.wait [#allocation5], 16  }
 0x372   :  { %986 = vsyncadd [#allocation5], 4294967280 }
 0x373   :  { %987 = dma.done.wait [#allocation13], 32  }
 0x374   :  { %988 = vsyncadd [#allocation13], 4294967264 }
 0x375   :  { %689 = vsyncpa [#allocation4], 1 }
 0x376   :  { %690 = vsyncpa [#allocation7], 1 }
 0x377   :  { %691 = vsyncpa [#allocation10], 1 }
 0x378   :  { %692 = vsyncpa [#allocation5], 1 }
 0x379   :  { %693 = vsyncpa [#allocation13], 1 }

</bundles_post_ra>
